<compile_context>
chip_gen: v7x
topology: tpu7x:2x2x1
jax: 0.10.0
libtpu: 0.0.40
codegen_flags: <defaults>
</compile_context>

<pallas_src>
import jax
import jax.numpy as jnp
from jax.experimental import pallas as pl
from jax.experimental.pallas import tpu as pltpu


def _round_up(x, m):
    return (x + m - 1) // m * m


def _kernel_vmem_bytes(T, TB, Hin, H):
    """Approximate VMEM footprint of one grid step (pipelined blocks x2)."""
    H3 = 3 * H
    dbl = 2                                   # default double buffering
    byt = dbl * T * TB * Hin * 2              # x block (bf16)
    byt += dbl * Hin * H3 * 2                 # fused W_ih (bf16)
    byt += dbl * H * H3 * 2                   # fused W_hh (bf16)
    byt += dbl * (H3 + H + TB) * 4            # fused bias, b_hn, lengths
    byt += dbl * T * TB * H * 4               # output block (f32)
    byt += dbl * TB * H * 4                   # final-hidden block (f32)
    byt += T * TB * H3 * 4                    # gi scratch (single copy, f32)
    byt += TB * H * 4                         # h scratch
    return byt


def _vmem_budget_bytes():
    try:
        cap = pltpu.get_tpu_info().vmem_capacity_bytes   # 64 MiB v7x, 128 MiB v5e/v6e
    except Exception:
        cap = 64 * 1024 * 1024                           # conservative fallback
    return int(cap * 0.8)


def _pick_batch_tile(B, T, Hin, H, budget):
    """Largest batch tile (multiple of 8, <=128) whose blocks fit the VMEM budget."""
    tb = min(128, _round_up(max(B, 1), 8))
    while tb > 8 and _kernel_vmem_bytes(T, tb, Hin, H) > budget:
        tb = max(8, _round_up(tb // 2, 8))
    return tb


def gru_session_kernel(maxlen_ref, len_ref, x_ref, wi_ref, bias_ref, wh_ref,
                       bhn_ref, out_ref, hfin_ref, gi_scratch, h_scratch):
    """One (batch tile, direction) grid step; whole tile resident in VMEM.

    maxlen_ref : SMEM (1,)          int32  max(lengths)             (scalar prefetch)
    len_ref    : VMEM (TB, 1)       int32  per-sequence lengths
    x_ref      : VMEM (T, TB, Hin)  bf16   raw inputs (shared by both directions)
    wi_ref     : VMEM (1, Hin, 3H)  bf16   fused input weights       [r|z|n]
    bias_ref   : VMEM (1, 1, 3H)    f32    b_ih + [b_hr|b_hz|0]
    wh_ref     : VMEM (1, H, 3H)    bf16   fused recurrent weights   [r|z|n]
    bhn_ref    : VMEM (1, 1, H)     f32    b_hn (must stay inside the r gate)
    out_ref    : VMEM (1, T, TB, H) f32    per-step hidden states (0 where padded)
    hfin_ref   : VMEM (1, TB, H)    f32    final hidden state
    gi_scratch : VMEM (T*TB, 3H)    f32    fused input projection (VMEM-only)
    h_scratch  : VMEM (TB, H)       f32    recurrent state
    """
    d = pl.program_id(1)                       # grid = (batch tiles, directions)
    T, TB, Hin = x_ref.shape
    H = hfin_ref.shape[-1]
    max_len = maxlen_ref[0]
    is_bwd = d == 1

    # Fused input projection: one large bf16 MXU matmul per grid step; gi never
    # touches HBM.  The (T, TB, Hin) -> (T*TB, Hin) merge is layout-preserving
    # because TB is a multiple of 8.
    x2d = x_ref[...].reshape(T * TB, Hin)
    gi_scratch[...] = jnp.dot(x2d, wi_ref[0],
                              preferred_element_type=jnp.float32) + bias_ref[0]

    # Loop-invariant hoists (JAX does not CSE broadcasts inside loops).
    wh = wh_ref[0]                                              # (H, 3H) bf16
    bh_n = jnp.broadcast_to(bhn_ref[0], (TB, H))                # (TB, H)  f32
    lens = len_ref[...]                                         # (TB, 1)  int32
    h_scratch[...] = jnp.zeros(h_scratch.shape, h_scratch.dtype)

    # Zero only timesteps past the longest sequence; every t < max_len position
    # is written by the recurrence below (padded rows there get exact zeros).
    @pl.loop(0, T)
    def _(t):
        @pl.when(t >= max_len)
        def _():
            out_ref[0, t] = jnp.zeros((TB, H), out_ref.dtype)

    # Serial GRU recurrence; the backward direction reads/writes time index
    # max_len-1-t, so no reversed copies / gathers are needed.
    @pl.loop(0, max_len)
    def _(t):
        data_t = jnp.where(is_bwd, max_len - 1 - t, t)
        row = pl.multiple_of(data_t * TB, TB)
        gi = gi_scratch[pl.ds(row, TB), :]                      # (TB, 3H) f32
        h = h_scratch[...]                                      # (TB, H)  f32
        gh = jnp.dot(h.astype(jnp.bfloat16), wh,
                     preferred_element_type=jnp.float32)        # (TB, 3H) f32
        # PyTorch GRU gate order [r, z, n]; b_hn stays inside the r gating.
        r = jax.nn.sigmoid(gi[:, :H] + gh[:, :H])
        z = jax.nn.sigmoid(gi[:, H:2 * H] + gh[:, H:2 * H])
        n = jnp.tanh(gi[:, 2 * H:] + r * (gh[:, 2 * H:] + bh_n))
        h_new = (1.0 - z) * n + z * h
        valid = data_t < lens                                   # (TB, 1) bool
        h_scratch[...] = jnp.where(valid, h_new, h)             # freeze past length
        out_ref[0, data_t] = jnp.where(valid, h_new, 0.0)       # zero padding

    hfin_ref[0] = h_scratch[...]                                # written once


@jax.jit
def session_gru_forward(inputs, lengths, wi, wh, bi, bh):
    """inputs (T,B,Hin) f32; lengths (B,); weights fused over gates [r|z|n]."""
    T, B, Hin = inputs.shape
    D, H, H3 = wh.shape
    assert H3 == 3 * H

    budget = _vmem_budget_bytes()
    TB = _pick_batch_tile(B, T, Hin, H, budget)
    Bp = _round_up(B, TB)
    NB = Bp // TB

    lengths = jnp.minimum(lengths.astype(jnp.int32), T)
    if Bp != B:                                   # padded rows: length 0 -> zeros
        inputs = jnp.pad(inputs, ((0, 0), (0, Bp - B), (0, 0)))
        lengths = jnp.pad(lengths, ((0, Bp - B),))

    x = inputs.astype(jnp.bfloat16)               # bf16 stream + MXU operand
    wi_b = wi.astype(jnp.bfloat16)
    wh_b = wh.astype(jnp.bfloat16)
    # Fold b_ih (all gates) and b_hr/b_hz (outside the r gating) into the fused
    # projection bias; keep b_hn separate (it sits inside the r gate).
    bias = bi.at[:, :2 * H].add(bh[:, :2 * H]).reshape(D, 1, H3).astype(jnp.float32)
    bhn = bh[:, 2 * H:].reshape(D, 1, H).astype(jnp.float32)

    len2 = lengths.reshape(Bp, 1)
    max_len = jnp.max(lengths).reshape((1,))

    vmem_limit = int(min(budget,
                         max(_kernel_vmem_bytes(T, TB, Hin, H) + (4 << 20),
                             32 << 20)))

    out, hfin = pl.pallas_call(
        gru_session_kernel,
        out_shape=(jax.ShapeDtypeStruct((D, T, Bp, H), jnp.float32),
                   jax.ShapeDtypeStruct((D, Bp, H), jnp.float32)),
        grid_spec=pltpu.PrefetchScalarGridSpec(
            num_scalar_prefetch=1,                        # max_len -> SMEM
            # Batch tiles outermost so the shared x block is fetched once per
            # tile (its block index is unchanged across the direction steps).
            grid=(NB, D),
            in_specs=[
                pl.BlockSpec((TB, 1), lambda b, d, ml: (b, 0)),            # lengths
                pl.BlockSpec((T, TB, Hin), lambda b, d, ml: (0, b, 0)),    # x bf16
                pl.BlockSpec((1, Hin, H3), lambda b, d, ml: (d, 0, 0)),    # Wi fused
                pl.BlockSpec((1, 1, H3), lambda b, d, ml: (d, 0, 0)),      # bias
                pl.BlockSpec((1, H, H3), lambda b, d, ml: (d, 0, 0)),      # Wh fused
                pl.BlockSpec((1, 1, H), lambda b, d, ml: (d, 0, 0)),       # b_hn
            ],
            out_specs=[
                pl.BlockSpec((1, T, TB, H), lambda b, d, ml: (d, 0, b, 0)),  # outs
                pl.BlockSpec((1, TB, H), lambda b, d, ml: (d, b, 0)),        # h_final
            ],
            scratch_shapes=[pltpu.VMEM((T * TB, H3), jnp.float32),
                            pltpu.VMEM((TB, H), jnp.float32)],
        ),
        compiler_params=pltpu.CompilerParams(
            dimension_semantics=("parallel", "parallel"),  # both TCs on v7x
            vmem_limit_bytes=vmem_limit),
    )(max_len, len2, x, wi_b, bias, wh_b, bhn)

    if Bp != B:
        out = out[:, :, :B]
        hfin = hfin[:, :B]
    return out, hfin


class SessionEncoderPallas:
    """GRU session encoder (rnn_type='GRU', encoder_num_layers=1)."""

    def __init__(self, hidden_size, bidirectional=True, seed=0):
        self.hidden_size = hidden_size
        self.bidirection_num = 2 if bidirectional else 1
        D = self.bidirection_num
        H = hidden_size // D
        Hin = hidden_size
        key = jax.random.PRNGKey(seed)
        k1, k2, k3, k4 = jax.random.split(key, 4)
        # Fused weights; gate order within the 3H axis is [r, z, n] (PyTorch).
        self.wi = jax.random.normal(k1, (D, Hin, 3 * H), jnp.float32) * 0.1
        self.wh = jax.random.normal(k2, (D, H, 3 * H), jnp.float32) * 0.1
        self.bi = jax.random.normal(k3, (D, 3 * H), jnp.float32) * 0.01
        self.bh = jax.random.normal(k4, (D, 3 * H), jnp.float32) * 0.01

    def __call__(self, inputs, lengths):
        """inputs: [turn_num, batch_size, hidden_size]; lengths: [batch_size]."""
        if lengths is None:
            raise ValueError('lengths is none.')
        out, hfin = session_gru_forward(inputs, lengths,
                                        self.wi, self.wh, self.bi, self.bh)
        if self.bidirection_num == 1:
            return out[0], hfin                                  # (T,B,H), (1,B,H)
        outputs = jnp.concatenate([out[0], out[1]], axis=-1)     # (T,B,hidden)
        return outputs, hfin                                     # (2,B,hidden//2)


def gru_reference(inputs, lengths, wi, wh, bi, bh):
    """Pure-JAX f32 reference with PyTorch packed-sequence semantics."""
    T, B, _ = inputs.shape
    D, H, _ = wh.shape
    outs, hfin = [], []
    for d in range(D):
        h = jnp.zeros((B, H), jnp.float32)
        out_d = jnp.zeros((T, B, H), jnp.float32)
        order = range(T) if d == 0 else range(T - 1, -1, -1)
        for t in order:
            gi = inputs[t] @ wi[d] + bi[d]
            gh = h @ wh[d] + bh[d]
            r = jax.nn.sigmoid(gi[:, :H] + gh[:, :H])
            z = jax.nn.sigmoid(gi[:, H:2 * H] + gh[:, H:2 * H])
            n = jnp.tanh(gi[:, 2 * H:] + r * gh[:, 2 * H:])
            h_new = (1.0 - z) * n + z * h
            valid = (t < lengths)[:, None]
            h = jnp.where(valid, h_new, h)
            out_d = out_d.at[t].set(jnp.where(valid, h_new, 0.0))
        outs.append(out_d)
        hfin.append(h)
    out = jnp.concatenate(outs, axis=-1) if D > 1 else outs[0]
    return out, jnp.stack(hfin)


if __name__ == "__main__":
    T, B, HIDDEN = 8, 4, 32
    key = jax.random.PRNGKey(0)
    k_in, _ = jax.random.split(key)
    inputs = jax.random.normal(k_in, (T, B, HIDDEN), jnp.float32)
    # lengths sorted descending (pack_padded_sequence enforce_sorted default).
    lengths = jnp.array([8, 6, 5, 3], dtype=jnp.int32)

    encoder = SessionEncoderPallas(hidden_size=HIDDEN, bidirectional=True, seed=0)
    outputs, hidden_state = encoder(inputs, lengths)
    jax.block_until_ready((outputs, hidden_state))

    assert outputs.shape == (T, B, HIDDEN)
    assert hidden_state.shape == (2, B, HIDDEN // 2)
    # Packed-sequence invariants: padded positions exactly zero, values finite.
    pad_mask = (jnp.arange(T)[:, None] >= lengths[None, :])[:, :, None]
    assert bool(jnp.all(jnp.where(pad_mask, outputs == 0.0, True)))
    assert bool(jnp.all(jnp.isfinite(outputs)))
    assert bool(jnp.all(jnp.isfinite(hidden_state)))

    # Numerical check vs a pure-JAX f32 reference (kernel uses bf16 MXU operands
    # with f32 accumulation -> loose tolerance).
    ref_out, ref_h = gru_reference(inputs, lengths,
                                   encoder.wi, encoder.wh, encoder.bi, encoder.bh)
    assert float(jnp.max(jnp.abs(outputs - ref_out))) < 5e-2
    assert float(jnp.max(jnp.abs(hidden_state - ref_h))) < 5e-2
    print("KERNEL_OK")
</pallas_src>

<mosaic_0001>
module attributes {stable_mosaic.version = 11 : i64} {
  func.func @gru_session_kernel(%arg0: i32, %arg1: i32, %arg2: memref<1xi32, #tpu.memory_space<smem>>, %arg3: memref<8x1xi32, #tpu.memory_space<vmem>>, %arg4: memref<8x8x32xbf16, #tpu.memory_space<vmem>>, %arg5: memref<1x32x48xbf16, #tpu.memory_space<vmem>>, %arg6: memref<1x1x48xf32, #tpu.memory_space<vmem>>, %arg7: memref<1x16x48xbf16, #tpu.memory_space<vmem>>, %arg8: memref<1x1x16xf32, #tpu.memory_space<vmem>>, %arg9: memref<1x8x8x16xf32, #tpu.memory_space<vmem>>, %arg10: memref<1x8x16xf32, #tpu.memory_space<vmem>>, %arg11: memref<64x48xf32, #tpu.memory_space<vmem>>, %arg12: memref<8x16xf32, #tpu.memory_space<vmem>>) attributes {dimension_semantics = [#tpu.dimension_semantics<parallel>, #tpu.dimension_semantics<parallel>], iteration_bounds = array<i64: 1, 2>, scalar_prefetch = 1 : i64, scratch_operands = 2 : i64, tpu.core_type = #tpu.core_type<tc>, window_params = [{transform_indices = @transform_0, window_bounds = array<i64: 8, 1>}, {transform_indices = @transform_1, window_bounds = array<i64: 8, 8, 32>}, {transform_indices = @transform_2, window_bounds = array<i64: 1, 32, 48>}, {transform_indices = @transform_3, window_bounds = array<i64: 1, 1, 48>}, {transform_indices = @transform_4, window_bounds = array<i64: 1, 16, 48>}, {transform_indices = @transform_5, window_bounds = array<i64: 1, 1, 16>}, {transform_indices = @transform_6, window_bounds = array<i64: 1, 8, 8, 16>}, {transform_indices = @transform_7, window_bounds = array<i64: 1, 8, 16>}]} {
    %c0 = arith.constant 0 : index
    %0 = memref.load %arg2[%c0] : memref<1xi32, #tpu.memory_space<smem>>
    %c1_i32 = arith.constant 1 : i32
    %1 = arith.cmpi eq, %arg1, %c1_i32 : i32
    %c0_0 = arith.constant 0 : index
    %c0_1 = arith.constant 0 : index
    %c0_2 = arith.constant 0 : index
    %2 = vector.load %arg4[%c0_0, %c0_1, %c0_2] : memref<8x8x32xbf16, #tpu.memory_space<vmem>>, vector<8x8x32xbf16>
    %3 = vector.shape_cast %2 : vector<8x8x32xbf16> to vector<64x32xbf16>
    %c0_3 = arith.constant 0 : index
    %c0_4 = arith.constant 0 : index
    %c0_5 = arith.constant 0 : index
    %4 = vector.load %arg5[%c0_3, %c0_4, %c0_5] : memref<1x32x48xbf16, #tpu.memory_space<vmem>>, vector<1x32x48xbf16>
    %5 = vector.shape_cast %4 : vector<1x32x48xbf16> to vector<32x48xbf16>
    %cst = arith.constant dense<0.000000e+00> : vector<64x48xf32>
    %6 = tpu.matmul %3, %5, %cst {dimension_numbers = #tpu.dot_dimension_numbers<[1], [0], [0], [1], [0, 0, 1, 1], [], []>} : vector<64x32xbf16>, vector<32x48xbf16>, vector<64x48xf32> -> vector<64x48xf32>
    %c0_6 = arith.constant 0 : index
    %c0_7 = arith.constant 0 : index
    %c0_8 = arith.constant 0 : index
    %7 = vector.load %arg6[%c0_6, %c0_7, %c0_8] : memref<1x1x48xf32, #tpu.memory_space<vmem>>, vector<1x1x48xf32>
    %8 = vector.shape_cast %7 : vector<1x1x48xf32> to vector<1x48xf32>
    %9 = vector.broadcast %8 : vector<1x48xf32> to vector<64x48xf32>
    %10 = arith.addf %6, %9 : vector<64x48xf32>
    %c0_9 = arith.constant 0 : index
    %c0_10 = arith.constant 0 : index
    %11 = vector.load %arg11[%c0_9, %c0_10] : memref<64x48xf32, #tpu.memory_space<vmem>>, vector<64x48xf32>
    tpu.vector_store %arg11[%c0_9, %c0_10], %10 {strides = array<i32>} : memref<64x48xf32, #tpu.memory_space<vmem>>, vector<64x48xf32>,
    %c0_11 = arith.constant 0 : index
    %c0_12 = arith.constant 0 : index
    %c0_13 = arith.constant 0 : index
    %12 = vector.load %arg7[%c0_11, %c0_12, %c0_13] : memref<1x16x48xbf16, #tpu.memory_space<vmem>>, vector<1x16x48xbf16>
    %13 = vector.shape_cast %12 : vector<1x16x48xbf16> to vector<16x48xbf16>
    %c0_14 = arith.constant 0 : index
    %c0_15 = arith.constant 0 : index
    %c0_16 = arith.constant 0 : index
    %14 = vector.load %arg8[%c0_14, %c0_15, %c0_16] : memref<1x1x16xf32, #tpu.memory_space<vmem>>, vector<1x1x16xf32>
    %15 = vector.shape_cast %14 : vector<1x1x16xf32> to vector<1x16xf32>
    %16 = vector.shape_cast %15 : vector<1x16xf32> to vector<1x16xf32>
    %17 = vector.broadcast %16 : vector<1x16xf32> to vector<8x16xf32>
    %c0_17 = arith.constant 0 : index
    %c0_18 = arith.constant 0 : index
    %18 = vector.load %arg3[%c0_17, %c0_18] : memref<8x1xi32, #tpu.memory_space<vmem>>, vector<8x1xi32>
    %cst_19 = arith.constant 0.000000e+00 : f32
    %19 = vector.broadcast %cst_19 : f32 to vector<8x16xf32>
    %c0_20 = arith.constant 0 : index
    %c0_21 = arith.constant 0 : index
    %20 = vector.load %arg12[%c0_20, %c0_21] : memref<8x16xf32, #tpu.memory_space<vmem>>, vector<8x16xf32>
    tpu.vector_store %arg12[%c0_20, %c0_21], %19 {strides = array<i32>} : memref<8x16xf32, #tpu.memory_space<vmem>>, vector<8x16xf32>,
    %c0_i32 = arith.constant 0 : i32
    %c8_i32 = arith.constant 8 : i32
    %21 = arith.addi %c0_i32, %c8_i32 : i32
    %c1_i32_22 = arith.constant 1 : i32
    scf.for %arg13 = %c0_i32 to %21 step %c1_i32_22  : i32 {
      %c1_i32_37 = arith.constant 1 : i32
      %32 = arith.muli %arg13, %c1_i32_37 : i32
      %c0_i32_38 = arith.constant 0 : i32
      %33 = arith.addi %c0_i32_38, %32 : i32
      %34 = arith.cmpi sge, %33, %0 : i32
      %35 = arith.extui %34 : i1 to i32
      %c0_i32_39 = arith.constant 0 : i32
      %36 = arith.cmpi ne, %35, %c0_i32_39 : i32
      scf.if %36 {
        %cst_40 = arith.constant 0.000000e+00 : f32
        %37 = vector.broadcast %cst_40 : f32 to vector<8x16xf32>
        %c0_41 = arith.constant 0 : index
        %38 = arith.index_cast %33 : i32 to index
        %c0_42 = arith.constant 0 : index
        %c0_43 = arith.constant 0 : index
        %39 = vector.load %arg9[%c0_41, %38, %c0_42, %c0_43] : memref<1x8x8x16xf32, #tpu.memory_space<vmem>>, vector<1x1x8x16xf32>
        %40 = vector.shape_cast %39 : vector<1x1x8x16xf32> to vector<8x16xf32>
        %41 = vector.shape_cast %37 : vector<8x16xf32> to vector<1x1x8x16xf32>
        tpu.vector_store %arg9[%c0_41, %38, %c0_42, %c0_43], %41 {strides = array<i32>} : memref<1x8x8x16xf32, #tpu.memory_space<vmem>>, vector<1x1x8x16xf32>,
      } else {
      }
    }
    %c8_i32_23 = arith.constant 8 : i32
    %c0_i32_24 = arith.constant 0 : i32
    %22 = arith.subi %0, %c0_i32_24 : i32
    %c1_i32_25 = arith.constant 1 : i32
    %c1_i32_26 = arith.constant 1 : i32
    %23 = arith.subi %c1_i32_25, %c1_i32_26 : i32
    %24 = arith.addi %22, %23 : i32
    %c1_i32_27 = arith.constant 1 : i32
    %25 = arith.divsi %24, %c1_i32_27 : i32
    %c1_i32_28 = arith.constant 1 : i32
    %c0_i32_29 = arith.constant 0 : i32
    %c0_i32_30 = arith.constant 0 : i32
    %26 = arith.subi %25, %c0_i32_30 : i32
    %27 = arith.addi %c0_i32_30, %26 : i32
    %c1_i32_31 = arith.constant 1 : i32
    scf.for %arg13 = %c0_i32_30 to %27 step %c1_i32_31  : i32 {
      %32 = arith.muli %arg13, %c1_i32_28 : i32
      %33 = arith.addi %c0_i32_29, %32 : i32
      %c1_i32_37 = arith.constant 1 : i32
      %34 = arith.subi %0, %c1_i32_37 : i32
      %35 = arith.subi %34, %33 : i32
      %36 = arith.select %1, %35, %33 : i32
      %c8_i32_38 = arith.constant 8 : i32
      %37 = arith.muli %36, %c8_i32_38 : i32
      %38 = tpu.assume_multiple %37, 8 : i32
      %39 = arith.index_cast %38 : i32 to index
      %c0_39 = arith.constant 0 : index
      %40 = vector.load %arg11[%39, %c0_39] : memref<64x48xf32, #tpu.memory_space<vmem>>, vector<8x48xf32>
      %c0_40 = arith.constant 0 : index
      %c0_41 = arith.constant 0 : index
      %41 = vector.load %arg12[%c0_40, %c0_41] : memref<8x16xf32, #tpu.memory_space<vmem>>, vector<8x16xf32>
      %42 = arith.truncf %41 : vector<8x16xf32> to vector<8x16xbf16>
      %cst_42 = arith.constant dense<0.000000e+00> : vector<8x48xf32>
      %43 = tpu.matmul %42, %13, %cst_42 {dimension_numbers = #tpu.dot_dimension_numbers<[1], [0], [0], [1], [0, 0, 1, 1], [], []>} : vector<8x16xbf16>, vector<16x48xbf16>, vector<8x48xf32> -> vector<8x48xf32>
      %44 = vector.extract_strided_slice %40 {offsets = [0, 0], sizes = [8, 16], strides = [1, 1]} : vector<8x48xf32> to vector<8x16xf32>
      %45 = vector.extract_strided_slice %43 {offsets = [0, 0], sizes = [8, 16], strides = [1, 1]} : vector<8x48xf32> to vector<8x16xf32>
      %46 = arith.addf %44, %45 : vector<8x16xf32>
      %47 = arith.negf %46 : vector<8x16xf32>
      %48 = math.exp %47 : vector<8x16xf32>
      %cst_43 = arith.constant 1.000000e+00 : f32
      %49 = vector.broadcast %cst_43 : f32 to vector<8x16xf32>
      %50 = arith.addf %49, %48 : vector<8x16xf32>
      %51 = arith.divf %49, %50 : vector<8x16xf32>
      %52 = vector.extract_strided_slice %40 {offsets = [0, 16], sizes = [8, 16], strides = [1, 1]} : vector<8x48xf32> to vector<8x16xf32>
      %53 = vector.extract_strided_slice %43 {offsets = [0, 16], sizes = [8, 16], strides = [1, 1]} : vector<8x48xf32> to vector<8x16xf32>
      %54 = arith.addf %52, %53 : vector<8x16xf32>
      %55 = arith.negf %54 : vector<8x16xf32>
      %56 = math.exp %55 : vector<8x16xf32>
      %cst_44 = arith.constant 1.000000e+00 : f32
      %57 = vector.broadcast %cst_44 : f32 to vector<8x16xf32>
      %58 = arith.addf %57, %56 : vector<8x16xf32>
      %59 = arith.divf %57, %58 : vector<8x16xf32>
      %60 = vector.extract_strided_slice %40 {offsets = [0, 32], sizes = [8, 16], strides = [1, 1]} : vector<8x48xf32> to vector<8x16xf32>
      %61 = vector.extract_strided_slice %43 {offsets = [0, 32], sizes = [8, 16], strides = [1, 1]} : vector<8x48xf32> to vector<8x16xf32>
      %62 = arith.addf %61, %17 : vector<8x16xf32>
      %63 = arith.mulf %51, %62 : vector<8x16xf32>
      %64 = arith.addf %60, %63 : vector<8x16xf32>
      %65 = math.tanh %64 : vector<8x16xf32>
      %cst_45 = arith.constant 1.000000e+00 : f32
      %66 = vector.broadcast %cst_45 : f32 to vector<8x16xf32>
      %67 = arith.subf %66, %59 : vector<8x16xf32>
      %68 = arith.mulf %67, %65 : vector<8x16xf32>
      %69 = arith.mulf %59, %41 : vector<8x16xf32>
      %70 = arith.addf %68, %69 : vector<8x16xf32>
      %71 = vector.broadcast %36 : i32 to vector<8x1xi32>
      %72 = arith.cmpi slt, %71, %18 : vector<8x1xi32>
      %73 = vector.shape_cast %72 : vector<8x1xi1> to vector<8x1xi1>
      %74 = vector.broadcast %73 : vector<8x1xi1> to vector<8x16xi1>
      %75 = arith.select %74, %70, %41 : vector<8x16xi1>, vector<8x16xf32>
      %c0_46 = arith.constant 0 : index
      %c0_47 = arith.constant 0 : index
      %76 = vector.load %arg12[%c0_46, %c0_47] : memref<8x16xf32, #tpu.memory_space<vmem>>, vector<8x16xf32>
      tpu.vector_store %arg12[%c0_46, %c0_47], %75 {strides = array<i32>} : memref<8x16xf32, #tpu.memory_space<vmem>>, vector<8x16xf32>,
      %cst_48 = arith.constant 0.000000e+00 : f32
      %77 = vector.shape_cast %72 : vector<8x1xi1> to vector<8x1xi1>
      %78 = vector.broadcast %77 : vector<8x1xi1> to vector<8x16xi1>
      %79 = vector.broadcast %cst_48 : f32 to vector<8x16xf32>
      %80 = arith.select %78, %70, %79 : vector<8x16xi1>, vector<8x16xf32>
      %c0_49 = arith.constant 0 : index
      %81 = arith.index_cast %36 : i32 to index
      %c0_50 = arith.constant 0 : index
      %c0_51 = arith.constant 0 : index
      %82 = vector.load %arg9[%c0_49, %81, %c0_50, %c0_51] : memref<1x8x8x16xf32, #tpu.memory_space<vmem>>, vector<1x1x8x16xf32>
      %83 = vector.shape_cast %82 : vector<1x1x8x16xf32> to vector<8x16xf32>
      %84 = vector.shape_cast %80 : vector<8x16xf32> to vector<1x1x8x16xf32>
      tpu.vector_store %arg9[%c0_49, %81, %c0_50, %c0_51], %84 {strides = array<i32>} : memref<1x8x8x16xf32, #tpu.memory_space<vmem>>, vector<1x1x8x16xf32>,
    }
    %c0_32 = arith.constant 0 : index
    %c0_33 = arith.constant 0 : index
    %28 = vector.load %arg12[%c0_32, %c0_33] : memref<8x16xf32, #tpu.memory_space<vmem>>, vector<8x16xf32>
    %c0_34 = arith.constant 0 : index
    %c0_35 = arith.constant 0 : index
    %c0_36 = arith.constant 0 : index
    %29 = vector.load %arg10[%c0_34, %c0_35, %c0_36] : memref<1x8x16xf32, #tpu.memory_space<vmem>>, vector<1x8x16xf32>
    %30 = vector.shape_cast %29 : vector<1x8x16xf32> to vector<8x16xf32>
    %31 = vector.shape_cast %28 : vector<8x16xf32> to vector<1x8x16xf32>
    tpu.vector_store %arg10[%c0_34, %c0_35, %c0_36], %31 {strides = array<i32>} : memref<1x8x16xf32, #tpu.memory_space<vmem>>, vector<1x8x16xf32>,
    return
  }
  func.func @transform_0(%arg0: i32, %arg1: i32, %arg2: memref<1xi32, #tpu.memory_space<smem>>) -> (i32, i32) {
    %c0_i32 = arith.constant 0 : i32
    %c0_i32_0 = arith.constant 0 : i32
    return %arg0, %c0_i32 : i32, i32
  }
  func.func @transform_1(%arg0: i32, %arg1: i32, %arg2: memref<1xi32, #tpu.memory_space<smem>>) -> (i32, i32, i32) {
    %c0_i32 = arith.constant 0 : i32
    %c0_i32_0 = arith.constant 0 : i32
    %c0_i32_1 = arith.constant 0 : i32
    return %c0_i32, %arg0, %c0_i32_0 : i32, i32, i32
  }
  func.func @transform_2(%arg0: i32, %arg1: i32, %arg2: memref<1xi32, #tpu.memory_space<smem>>) -> (i32, i32, i32) {
    %c0_i32 = arith.constant 0 : i32
    %c0_i32_0 = arith.constant 0 : i32
    %c0_i32_1 = arith.constant 0 : i32
    return %arg1, %c0_i32, %c0_i32_0 : i32, i32, i32
  }
  func.func @transform_3(%arg0: i32, %arg1: i32, %arg2: memref<1xi32, #tpu.memory_space<smem>>) -> (i32, i32, i32) {
    %c0_i32 = arith.constant 0 : i32
    %c0_i32_0 = arith.constant 0 : i32
    %c0_i32_1 = arith.constant 0 : i32
    return %arg1, %c0_i32, %c0_i32_0 : i32, i32, i32
  }
  func.func @transform_4(%arg0: i32, %arg1: i32, %arg2: memref<1xi32, #tpu.memory_space<smem>>) -> (i32, i32, i32) {
    %c0_i32 = arith.constant 0 : i32
    %c0_i32_0 = arith.constant 0 : i32
    %c0_i32_1 = arith.constant 0 : i32
    return %arg1, %c0_i32, %c0_i32_0 : i32, i32, i32
  }
  func.func @transform_5(%arg0: i32, %arg1: i32, %arg2: memref<1xi32, #tpu.memory_space<smem>>) -> (i32, i32, i32) {
    %c0_i32 = arith.constant 0 : i32
    %c0_i32_0 = arith.constant 0 : i32
    %c0_i32_1 = arith.constant 0 : i32
    return %arg1, %c0_i32, %c0_i32_0 : i32, i32, i32
  }
  func.func @transform_6(%arg0: i32, %arg1: i32, %arg2: memref<1xi32, #tpu.memory_space<smem>>) -> (i32, i32, i32, i32) {
    %c0_i32 = arith.constant 0 : i32
    %c0_i32_0 = arith.constant 0 : i32
    %c0_i32_1 = arith.constant 0 : i32
    return %arg1, %c0_i32, %arg0, %c0_i32_0 : i32, i32, i32, i32
  }
  func.func @transform_7(%arg0: i32, %arg1: i32, %arg2: memref<1xi32, #tpu.memory_space<smem>>) -> (i32, i32, i32) {
    %c0_i32 = arith.constant 0 : i32
    %c0_i32_0 = arith.constant 0 : i32
    return %arg1, %arg0, %c0_i32 : i32, i32, i32
  }
}

</mosaic_0001>

<bundles_post_ra>
// kernel: session_gru_forward.1
= control target key start
LH: loop header
LB: loop body
LE: loop exit
PB: predicated region body
PF: predicated region fallthrough
CT: control target
= control target key end

     0   :  { %s1110_s29 = smov 0   ;;  %s1112_s30 = smov 0   ;;  %s1247_s0 = inlined_call_operand.<no memory space> [shape: s32[1], index: 0, kind: input, shape index: {}]   ;;  %s1248_s1 = inlined_call_operand.vmem [shape: s32[8,1], index: 1, kind: input, shape index: {}]   ;;  %s1249_s2 = inlined_call_operand.vmem [shape: bf16[8,8,32], index: 2, kind: input, shape index: {}]   ;;  %s1250_s3 = inlined_call_operand.vmem [shape: bf16[2,32,48], index: 3, kind: input, shape index: {}]   ;;  %s1251_s4 = inlined_call_operand.vmem [shape: f32[2,1,48], index: 4, kind: input, shape index: {}]   ;;  %s1252_s5 = inlined_call_operand.vmem [shape: bf16[2,16,48], index: 5, kind: input, shape index: {}]   ;;  %s1253_s6 = inlined_call_operand.vmem [shape: f32[2,1,16], index: 6, kind: input, shape index: {}]   ;;  %s1254_s7 = inlined_call_operand.vmem [shape: f32[2,8,8,16], index: 7, kind: output, shape index: {0}]   ;;  %s1255_s8 = inlined_call_operand.vmem [shape: f32[2,8,16], index: 8, kind: output, shape index: {1}]  }
   0x1   :  { %14 = sst [smem:[#allocation5]] %s1247_s0  ;;  %s1114_s9 = smov 0  }
   0x2 LB: > { %s29_s0 = sadd.s32 1, %s1039_s30  ;;  %p887_p0 = scmp.ge.s32.totalorder %s1043_s9, 1  ;;  %s1043_s9 = sphi %s1114_s9, %s20_s9   ;;  %s1039_s30 = sphi %s1112_s30, %s1257_s30   ;;  %s1035_s29 = sphi %s1110_s29, %s1256_s29  }
   0x3   : > { %p30_p1 = scmp.ge.s32.totalorder %s29_s0, 2  ;;  %p302_p2 = scmp.lt.s32.totalorder %s1043_s9, 3 }
   0x5   : > { %s1259_s0 = smov (%p30_p1, %s29_s0), 0  ;;  %p303_p3 = pnand %p887_p0, %p302_p2 }
   0x6   : > { %p371_p4 = scmp.lt.s32.totalorder (!%p303_p3), %s1035_s29, 1  ;;  %s1131_s10 = sld [smem:[#allocation5]] (!%p303_p3)  ;;  %v1001_v0 = vld [vmem:[%s1249_s2] sm:$0xff] (!%p303_p3)   ;;  %vm456_vm0 = vcmask (!%p303_p3), 261120   ;;  %v1002_v1 = vld [vmem:[%s1249_s2 + $0x10] sm:$0xff] (!%p303_p3)   ;;  %v1003_v7 = vld [vmem:[%s1249_s2 + $0x8] sm:$0xff] (!%p303_p3)  }
   0x7   : > { %306 = sbr.rel (%p303_p3) target bundleno = 979 (0x3d3), region = 44  ;;  %p404_p5 = scmp.eq.s32.totalorder (!%p303_p3), %s1035_s29, 1  ;;  %932 = vmatprep.mubr.msk.bf16.mxu0 (!%p303_p3), %vm456_vm0, %v1001_v0  ;;  %936 = vmatprep.mubr.msk.bf16.mxu1 (!%p303_p3), %vm456_vm0, %v1002_v1  ;;  %v1004_v8 = vld [vmem:[%s1249_s2 + $0x18] sm:$0xff] (!%p303_p3)   ;;  %vm552_vm1 = vcmask (!%p303_p3), 130048   ;;  %v1185_v9 = vld [vmem:[%s1248_s1] sm:$0xff] (!%p303_p3)  ;;  %v1053_v10 = vmov (!%p303_p3), 0.0  }
   0x8   : > { %553 = vst.msk [vmem:[#allocation3] sm:$0xff] (!%p303_p3), %vm552_vm1, %v1053_v10  ;;  %vm534_vm2 = vcmask (!%p303_p3), 392192  }
   0xe   : > { %s1138_s13 = scalar_select %p371_p4, %s1035_s29, 1 }
  0x10   : > { %s917_s16 = sshll.u32 %s1138_s13, 4  ;;  %s918_s17 = sshll.u32 %s1138_s13, 3 }
  0x11   : > { %s375_s20 = scalar_lea.vmem %s1250_s3, %s917_s16  ;;  %s383_s23 = scalar_lea.vmem %s1252_s5, %s918_s17 }
  0x12   : > { %s386_s26 = scalar_lea.vmem %s1253_s6, %s1138_s13  ;;  %s919_s27 = sshll.u32 %s1138_s13, 6  ;;  %v999_v2 = vld [vmem:[%s375_s20] sm:$0xff]   ;;  %v1000_v6 = vld [vmem:[%s375_s20 + $0x8] sm:$0xff]  }
  0x13   : > { %s1161_s12 = scalar_lea.vmem %s1254_s7, %s919_s27  ;;  %s1166_s18 = scalar_lea.vmem %s1255_s8, %s918_s17  ;;  %v1168_v3 = vld [vmem:[%s383_s23] sm:$0xf]  ;;  %v1170_v4 = vld [vmem:[%s383_s23 + $0x4] sm:$0xf]  ;;  %928 = vmatprep.subr.bf16.mxu0 %v999_v2  ;;  %946 = vmatprep.subr.bf16.mxu1 %v999_v2 }
  0x14   : > { %v1172_v5 = vld [vmem:[%s386_s26] ss:$0 sm:$0xff]  ;;  %929 = vmatpush3.bf16.msra.mxu0 %v999_v2  ;;  %948 = vmatpush3.bf16.msra.mxu1 %v999_v2  ;;  %s378_s25 = scalar_lea.vmem %s1251_s4, %s1138_s13  ;;  %s1045_s13 = smov 0  }
  0x15   : > { %930 = vmatprep.subr.bf16.mxu0 %v1000_v6  ;;  %947 = vmatprep.subr.bf16.mxu1 %v1000_v6  ;;  %v895_v11 = vld [vmem:[%s378_s25] ss:$0 sm:$0xff] }
  0x18   : > { %931 = vmatpush3.bf16.msra.mxu0 %v1000_v6  ;;  %949 = vmatpush3.bf16.msra.mxu1 %v1000_v6 }
  0x1b   : > { %933 = vmatmul.mubr.msk.bf16.vlgmr.msra.gmra.mrb[0].mxu0 %vm456_vm0, %v1003_v7  ;;  %937 = vmatmul.mubr.msk.bf16.vlgmr.msra.gmra.mrb[0].mxu1 %vm456_vm0, %v1004_v8 }
  0xee   : > { %v934_v12 = vpop.f32.mrb[0].mxu0  ;;  %v938_v13 = vpop.f32.mrb[0].mxu1 }
  0xef   : > { %v512_v14 = vadd.f32 %v934_v12, %v895_v11  ;;  %v528_v15 = vadd.f32 %v938_v13, %v895_v11  ;;  %v503_v16 = vpop.f32.mrb[1].mxu0  ;;  %v519_v17 = vpop.f32.mrb[1].mxu1 }
  0xf0   : > { %v504_v18 = vadd.f32 %v895_v11, %v503_v16  ;;  %v520_v19 = vadd.f32 %v895_v11, %v519_v17  ;;  %v935_v20 = vpop.f32.mrb[2].mxu0  ;;  %v939_v21 = vpop.f32.mrb[2].mxu1 }
  0xf1   : > { %537 = vst.msk [vmem:[#allocation2 + $0x10] sm:$0xff] %vm534_vm2, %v512_v14  ;;  %541 = vst.msk [vmem:[#allocation2 + $0x30] sm:$0xff] %vm534_vm2, %v528_v15  ;;  %v515_v22 = vadd.f32 %v935_v20, %v895_v11  ;;  %v531_v23 = vadd.f32 %v939_v21, %v895_v11  ;;  %v506_v24 = vpop.f32.mrb[3].mxu0  ;;  %v522_v25 = vpop.f32.mrb[3].mxu1 }
  0xf2   : > { %535 = vst.msk [vmem:[#allocation2] sm:$0xff] %vm534_vm2, %v504_v18  ;;  %539 = vst.msk [vmem:[#allocation2 + $0x20] sm:$0xff] %vm534_vm2, %v520_v19  ;;  %v507_v26 = vadd.f32 %v895_v11, %v506_v24  ;;  %v523_v27 = vadd.f32 %v895_v11, %v522_v25 }
  0xf3   : > { %538 = vst.msk [vmem:[#allocation2 + $0x18] sm:$0xff] %vm534_vm2, %v515_v22  ;;  %542 = vst.msk [vmem:[#allocation2 + $0x38] sm:$0xff] %vm534_vm2, %v531_v23 }
  0xf4   : > { %536 = vst.msk [vmem:[#allocation2 + $0x8] sm:$0xff] %vm534_vm2, %v507_v26  ;;  %540 = vst.msk [vmem:[#allocation2 + $0x28] sm:$0xff] %vm534_vm2, %v523_v27 }
  0xf5 LB: >> { %p907_p6 = scmp.lt.s32.totalorder %s1047_s13, %s1131_s10  ;;  %s1047_s13 = sphi %s1045_s13, %s559_s13  }
  0xf6   : >> { %s908_s26 = sshll.u32 (!%p907_p6), %s1047_s13, 3  ;;  %v1054_v28 = vmov (!%p907_p6), 0.0  }
  0xf7   : >> { %563 = sbr.rel (%p907_p6) target bundleno = 254 (0xfe), region = 55  ;;  %s565_s27 = scalar_lea.vmem (!%p907_p6), %s1161_s12, %s908_s26 }
  0xf8   : >> { %566 = vst.msk [vmem:[%s565_s27] sm:$0xff] (!%p907_p6), %vm552_vm1, %v1054_v28 }
  0xfe PF: >> { %s559_s13 = sadd.s32 1, %s1047_s13  }
  0xff   : >> { %p556_p7 = scmp.ge.s32.totalorder %s559_s13, 8  }
 0x100   : > { %p909_p8 = scmp.le.s32.totalorder (%p556_p7), %s1131_s10, 0 }
 0x101   : > { %558 = sbr.rel (!%p556_p7) target bundleno = 245 (0xf5), region = 122 }
 0x108   : > { %804 = sbr.rel (%p909_p8) target bundleno = 971 (0x3cb), region = 127  ;;  %s1204_s28 = smov (!%p909_p8), 0  }
 0x10f LB: >> { %v912_v29 = vcombine.low %v1168_v3, %v1170_v4  ;;  %v579_v30 = vld [vmem:[#allocation3] sm:$0xff]  ;;  %v1055_v31 = vmov 0.0   ;;  %vm1056_vm3 = vmmov 0   ;;  %s1057_s11 = smov 32   ;;  %v1058_v33 = vmov 0   ;;  %s1059_s14 = smov 96   ;;  %s1051_s28 = sphi %s1204_s28, %s570_s28  }
 0x110   : >> { %940 = vmatprep.subr.bf16.mxu0 %v1055_v31  ;;  %942 = vmatprep.mubr.msk.bf16.mxu0 %vm1056_vm3, %v1055_v31  ;;  %v580_v32 = vpack.c.bf16 %v579_v30, %v579_v30  ;;  %s910_s15 = sadd.s32 4294967295, %s1131_s10  ;;  %s1060_s21 = smov 16  }
 0x111   : >> { %941 = vmatpush3.bf16.msra.mxu0 %v912_v29  ;;  %637 = vrot.lane.b32.xlu0 %v1172_v5, %s1057_s11  ;;  %s574_s16 = ssub.s32 %s910_s15, %s1051_s28  ;;  %s1061_s20 = smov 112  }
 0x112   : >> { %1005 = vset.pattern.permute.xlu1 %v1058_v33  ;;  %1006 = vset.pattern.permute.xlu0 %v1058_v33  ;;  %s1261_s16 = smov (!%p404_p5, %s574_s16), %s1051_s28  ;;  %s570_s28 = sadd.s32 1, %s1051_s28  }
 0x113   : >> { %s911_s19 = sshll.u32 %s1261_s16, 3  ;;  %v664_v45 = vstv %s1261_s16  ;;  %p569_p9 = scmp.ge.s32.totalorder %s570_s28, %s1131_s10 }
 0x114   : >> { %943 = vmatmul.mubr.msk.bf16.vlgmr.msra.gmra.mrb[0].mxu0 %vm552_vm1, %v580_v32  ;;  %s577_s17 = scalar_lea.vmem [#allocation2], %s911_s19  ;;  %vm665_vm4 = vcmp.lt.s32.totalorder %v664_v45, %v1185_v9  ;;  %s682_s22 = scalar_lea.vmem %s1161_s12, %s911_s19 }
 0x115   : >> { %v578_v40 = vld [vmem:[%s577_s17] sm:$0xff]  ;;  %v666_v49 = vsel %vm665_vm4, 1, %v1058_v33 }
 0x183   : >> { %v638_v34 = vpop.permute.xlu0 %637 }
 0x1e7   : >> { %v624_v35 = vpop.f32.mrb[0].mxu0 }
 0x1e8   : >> { %v640_v36 = vadd.f32 %v638_v34, %v624_v35  ;;  %v944_v37 = vpop.f32.mrb[1].mxu0  ;;  %v630_v41 = vadd.f32 %v624_v35, %v578_v40 }
 0x1e9   : >> { %v627_v38 = vpop.f32.mrb[2].mxu0 }
 0x1ea   : >> { %642 = vrot.lane.b32.xlu0 %v640_v36, %s1059_s14  ;;  %v945_v39 = vpop.f32.mrb[3].mxu0  ;;  %v914_v42 = vmul.f32 -1.442695, %v630_v41 }
 0x1ec   : >> { %1007 = vpow2.f32 %v914_v42 }
 0x1f6   : >> { %v1008_v43 = vpop.eup %1007 }
 0x1f7   : >> { %v634_v44 = vadd.f32 1.0, %v1008_v43 }
 0x1f9   : >> { %1009 = vrcp.f32 %v634_v44 }
 0x203   : >> { %v1010_v46 = vpop.eup %1009 }
 0x204   : >> { %v652_v55 = vsub.f32 1.0, %v1010_v46 }
 0x25c   : >> { %v643_v47 = vpop.permute.xlu0 %642 }
 0x25d   : >> { %v645_v48 = vmul.f32 %v1010_v46, %v643_v47 }
 0x25f   : >> { %647 = vrot.lane.b32.xlu1 %v645_v48, %s1057_s11 }
 0x263   : >> { %668 = vperm.xlu1 %1005, %v666_v49  }
 0x267   : >> { %659 = vrot.lane.b32.xlu1 %v579_v30, %s1060_s21 }
 0x2d1   : >> { %v648_v50 = vpop.permute.xlu1 %647 }
 0x2d2   : >> { %v650_v51 = vadd.f32 %v648_v50, %v578_v40 }
 0x2d4   : >> { %1011 = vtanh.f32 %v650_v51 }
 0x2de   : >> { %v1012_v52 = vpop.eup %1011 }
 0x2df   : >> { %654 = vrot.lane.b32.xlu0 %v1012_v52, %s1061_s20 }
 0x2e2   : >> { %v669_v53 = vpop.permute.xlu1 %668 }
 0x2e3   : >> { %vm670_vm5 = vcmp.eq.s32.totalorder %v669_v53, 1 }
 0x2e6   : >> { %v660_v54 = vpop.permute.xlu1 %659 }
 0x2e7   : >> { %v662_v57 = vmul.f32 %v1010_v46, %v660_v54 }
 0x351   : >> { %v655_v56 = vpop.permute.xlu0 %654 }
 0x352   : >> { %v657_v58 = vmul.f32 %v655_v56, %v652_v55 }
 0x354   : >> { %v663_v59 = vadd.f32 %v662_v57, %v657_v58 }
 0x356   : >> { %v677_v60 = vsel %vm670_vm5, %v663_v59, 0.0  ;;  %v671_v61 = vsel %vm670_vm5, %v663_v59, %v660_v54 }
 0x357   : >> { %679 = vrot.lane.b32.xlu1 %v677_v60, %s1061_s20  ;;  %673 = vrot.lane.b32.xlu0 %v671_v61, %s1061_s20 }
 0x3c4   : > { %572 = sbr.rel (!%p569_p9) target bundleno = 271 (0x10f), region = 133 }
 0x3c9   : >> { %v680_v62 = vpop.permute.xlu1 %679  ;;  %v674_v63 = vpop.permute.xlu0 %673 }
 0x3ca   : >> { %683 = vst.msk [vmem:[%s682_s22] sm:$0xff] %vm552_vm1, %v680_v62  ;;  %676 = vst.msk [vmem:[#allocation3] sm:$0xff] %vm552_vm1, %v674_v63 }
 0x3cb PF:  {}
 0x3d1   : > { %v684_v0 = vld [vmem:[#allocation3] sm:$0xff] }
 0x3d2   : > { %685 = vst.msk [vmem:[%s1166_s18] sm:$0xff] %vm552_vm1, %v684_v0 }
 0x3d3 PF: > { %s20_s9 = sadd.s32 1, %s1043_s9   ;;  %s1256_s29 = smov %s1039_s30 }
 0x3d4   : > { %p17_p10 = scmp.ge.s32.totalorder %s20_s9, 4   ;;  %s1257_s30 = smov %s1259_s0 }
 0x3d6   :  { %19 = sbr.rel (!%p17_p10) target bundleno = 2 (0x2), region = 144 }

</bundles_post_ra>
